<compile_context>
chip_gen: v6e
topology: v6e:2x2x1
jax: 0.10.0
libtpu: 0.0.40
codegen_flags: <defaults>
</compile_context>

<pallas_src>
import functools

import jax
import jax.numpy as jnp
from jax.experimental import pallas as pl
from jax.experimental.pallas import tpu as pltpu


def _upconv_matmul_kernel(x_ref, w_ref, b_ref, o_ref):
    # x_ref: (1, Cin, TM)   w_ref: (Cout*4, Cin)   b_ref: (Cout*4, 1)
    # o_ref: (1, Cout*4, TM)   -- spatial (TM) on lanes, lane-dense output.
    acc = jnp.dot(
        w_ref[...],
        x_ref[0],
        preferred_element_type=jnp.float32,
        precision=jax.lax.Precision.HIGHEST,
    )
    o_ref[0] = (acc + b_ref[...]).astype(o_ref.dtype)


def _pick_spatial_tile(s, cap):
    """Largest multiple-of-128 divisor of s that is <= cap; else s itself."""
    if s <= cap or s % 128 != 0:
        return s
    t = cap - (cap % 128)
    while t >= 128:
        if s % t == 0:
            return t
        t -= 128
    return s


@functools.partial(jax.jit, static_argnames=("tile_cap",))
def up_block_forward(x_nchw, weight, bias, *, tile_cap=2048):
    """ConvTranspose2d(k=2, s=2) forward.

    Args:
      x_nchw: (N, Cin, H, W) float32  -- PyTorch NCHW layout.
      weight: (Cin, Cout, 2, 2) float32 -- PyTorch ConvTranspose2d weight layout.
      bias:   (Cout,) float32
    Returns:
      (N, Cout, 2H, 2W) float32 in NCHW layout.
    """
    N, Cin, H, W = x_nchw.shape
    Cout = weight.shape[1]
    S = H * W
    Kq = Cout * 4

    # Free reshape (same memory order): NCHW -> (N, Cin, H*W). No transpose, no pad.
    x_flat = x_nchw.reshape(N, Cin, S)
    # weight (Cin, Cout, 2, 2) -> (Cout*4, Cin), row q = co*4 + kh*2 + kw.  Tiny.
    w_t = jnp.transpose(weight.reshape(Cin, Kq))
    # bias per output row q (broadcast over the 4 sub-pixels of each channel).
    b_col = jnp.repeat(bias, 4).reshape(Kq, 1)

    tm = _pick_spatial_tile(S, tile_cap)
    grid = (N, S // tm)

    flops = 2 * N * S * Cin * Kq
    bytes_accessed = 4 * (N * S * Cin + N * S * Kq + Cin * Kq + Kq)

    y_flat = pl.pallas_call(
        _upconv_matmul_kernel,
        out_shape=jax.ShapeDtypeStruct((N, Kq, S), x_nchw.dtype),
        grid=grid,
        in_specs=[
            pl.BlockSpec((1, Cin, tm), lambda n, s: (n, 0, s)),
            pl.BlockSpec((Kq, Cin), lambda n, s: (0, 0)),
            pl.BlockSpec((Kq, 1), lambda n, s: (0, 0)),
        ],
        out_specs=pl.BlockSpec((1, Kq, tm), lambda n, s: (n, 0, s)),
        compiler_params=pltpu.CompilerParams(
            dimension_semantics=("parallel", "parallel")),
        cost_estimate=pl.CostEstimate(
            flops=flops, transcendentals=0, bytes_accessed=bytes_accessed),
    )(x_flat, w_t, b_col)

    # (N, Cout*4, H*W) -> NCHW (N, Cout, 2H, 2W): a single XLA transpose.
    # TODO(synk): fold this 2x2 sub-pixel interleave into the kernel store once
    # lane-strided / lane-interleaved stores are robustly expressible in Mosaic.
    y = y_flat.reshape(N, Cout, 2, 2, H, W)          # (n, co, kh, kw, i, j)
    y = jnp.transpose(y, (0, 1, 4, 2, 5, 3))         # (n, co, i, kh, j, kw)
    return y.reshape(N, Cout, 2 * H, 2 * W)


def _reference_upconv(x_nchw, weight, bias):
    # Pure-JAX reference for the k=2/s=2 transposed conv (no Pallas).
    # x: (N, Cin, H, W) labeled n c i j ; weight: (Cin, Cout, 2, 2) labeled c d h w.
    y = jnp.einsum("ncij,cdhw->ndihjw", x_nchw, weight,
                   precision=jax.lax.Precision.HIGHEST)
    N, Cout, H, _, W, _ = y.shape
    y = y.reshape(N, Cout, 2 * H, 2 * W)
    return y + bias[None, :, None, None]


if __name__ == "__main__":
    # Small deterministic example consistent with the module:
    # dim_in=4, dim_out=8, batch=2, spatial=16x16.
    N, Cin, Cout, H, W = 2, 4, 8, 16, 16

    key = jax.random.PRNGKey(0)
    kx, kw, kb = jax.random.split(key, 3)
    x = jax.random.normal(kx, (N, Cin, H, W), dtype=jnp.float32)
    # PyTorch ConvTranspose2d weight shape: (in_channels, out_channels, kH, kW)
    weight = 0.1 * jax.random.normal(kw, (Cin, Cout, 2, 2), dtype=jnp.float32)
    bias = 0.1 * jax.random.normal(kb, (Cout,), dtype=jnp.float32)

    out = up_block_forward(x, weight, bias)
    out = jax.block_until_ready(out)

    assert out.shape == (N, Cout, 2 * H, 2 * W), out.shape

    ref = _reference_upconv(x, weight, bias)
    max_err = float(jnp.max(jnp.abs(out - ref)))
    assert jnp.allclose(out, ref, atol=1e-4, rtol=1e-4), f"mismatch vs reference, max_err={max_err}"

    print("KERNEL_OK")
</pallas_src>

<mosaic_0001>
module attributes {stable_mosaic.version = 11 : i64} {
  func.func @_upconv_matmul_kernel(%arg0: i32, %arg1: i32, %arg2: memref<1x4x256xf32, #tpu.memory_space<vmem>>, %arg3: memref<32x4xf32, #tpu.memory_space<vmem>>, %arg4: memref<32x1xf32, #tpu.memory_space<vmem>>, %arg5: memref<1x32x256xf32, #tpu.memory_space<vmem>>) attributes {dimension_semantics = [#tpu.dimension_semantics<parallel>, #tpu.dimension_semantics<parallel>], iteration_bounds = array<i64: 2, 1>, scalar_prefetch = 0 : i64, scratch_operands = 0 : i64, tpu.core_type = #tpu.core_type<tc>, window_params = [{transform_indices = @transform_0, window_bounds = array<i64: 1, 4, 256>}, {pipeline_mode = #tpu.pipeline_mode<synchronous>, transform_indices = @transform_1, window_bounds = array<i64: 32, 4>}, {pipeline_mode = #tpu.pipeline_mode<synchronous>, transform_indices = @transform_2, window_bounds = array<i64: 32, 1>}, {transform_indices = @transform_3, window_bounds = array<i64: 1, 32, 256>}]} {
    %c0 = arith.constant 0 : index
    %c0_0 = arith.constant 0 : index
    %0 = vector.load %arg3[%c0, %c0_0] : memref<32x4xf32, #tpu.memory_space<vmem>>, vector<32x4xf32>
    %c0_1 = arith.constant 0 : index
    %c0_2 = arith.constant 0 : index
    %c0_3 = arith.constant 0 : index
    %1 = vector.load %arg2[%c0_1, %c0_2, %c0_3] : memref<1x4x256xf32, #tpu.memory_space<vmem>>, vector<1x4x256xf32>
    %2 = vector.shape_cast %1 : vector<1x4x256xf32> to vector<4x256xf32>
    %cst = arith.constant dense<0.000000e+00> : vector<32x256xf32>
    %3 = tpu.matmul %0, %2, %cst {dimension_numbers = #tpu.dot_dimension_numbers<[1], [0], [0], [1], [0, 0, 1, 1], [], []>, precision = #tpu.contract_precision<fp32>} : vector<32x4xf32>, vector<4x256xf32>, vector<32x256xf32> -> vector<32x256xf32>
    %c0_4 = arith.constant 0 : index
    %c0_5 = arith.constant 0 : index
    %4 = vector.load %arg4[%c0_4, %c0_5] : memref<32x1xf32, #tpu.memory_space<vmem>>, vector<32x1xf32>
    %5 = vector.broadcast %4 : vector<32x1xf32> to vector<32x256xf32>
    %6 = arith.addf %3, %5 : vector<32x256xf32>
    %c0_6 = arith.constant 0 : index
    %c0_7 = arith.constant 0 : index
    %c0_8 = arith.constant 0 : index
    %7 = vector.load %arg5[%c0_6, %c0_7, %c0_8] : memref<1x32x256xf32, #tpu.memory_space<vmem>>, vector<1x32x256xf32>
    %8 = vector.shape_cast %7 : vector<1x32x256xf32> to vector<32x256xf32>
    %9 = vector.shape_cast %6 : vector<32x256xf32> to vector<1x32x256xf32>
    tpu.vector_store %arg5[%c0_6, %c0_7, %c0_8], %9 {strides = array<i32>} : memref<1x32x256xf32, #tpu.memory_space<vmem>>, vector<1x32x256xf32>,
    return
  }
  func.func @transform_0(%arg0: i32, %arg1: i32) -> (i32, i32, i32) {
    %c0_i32 = arith.constant 0 : i32
    %c0_i32_0 = arith.constant 0 : i32
    return %arg0, %c0_i32, %arg1 : i32, i32, i32
  }
  func.func @transform_1(%arg0: i32, %arg1: i32) -> (i32, i32) {
    %c0_i32 = arith.constant 0 : i32
    %c0_i32_0 = arith.constant 0 : i32
    %c0_i32_1 = arith.constant 0 : i32
    return %c0_i32, %c0_i32_0 : i32, i32
  }
  func.func @transform_2(%arg0: i32, %arg1: i32) -> (i32, i32) {
    %c0_i32 = arith.constant 0 : i32
    %c0_i32_0 = arith.constant 0 : i32
    %c0_i32_1 = arith.constant 0 : i32
    return %c0_i32, %c0_i32_0 : i32, i32
  }
  func.func @transform_3(%arg0: i32, %arg1: i32) -> (i32, i32, i32) {
    %c0_i32 = arith.constant 0 : i32
    %c0_i32_0 = arith.constant 0 : i32
    return %arg0, %c0_i32, %arg1 : i32, i32, i32
  }
}

</mosaic_0001>

<bundles_post_ra>
// kernel: up_block_forward.1
= control target key start
LH: loop header
LB: loop body
LE: loop exit
PB: predicated region body
PF: predicated region fallthrough
CT: control target
= control target key end

     0   :  { %s1054_s12 = smov 0   ;;  %s1056_s13 = smov 0   ;;  %s1200_s0 = inlined_call_operand.vmem [shape: f32[2,4,256], index: 0, kind: input, shape index: {}]   ;;  %s1201_s1 = inlined_call_operand.vmem [shape: f32[32,4], index: 1, kind: input, shape index: {}]   ;;  %s1202_s2 = inlined_call_operand.vmem [shape: f32[32,1], index: 2, kind: input, shape index: {}]   ;;  %s1203_s3 = inlined_call_operand.vmem [shape: f32[2,32,256], index: 3, kind: output, shape index: {}]  }
   0x1   :  { %s1058_s14 = smov 0  }
   0x2 LB: > { %s25_s15 = sadd.s32 1, %s1026_s13  ;;  %p970_p0 = scmp.ge.s32.totalorder %s1030_s14, 1  ;;  %s1030_s14 = sphi %s1058_s14, %s13_s14   ;;  %s1026_s13 = sphi %s1056_s13, %s1205_s13   ;;  %s1022_s12 = sphi %s1054_s12, %s1204_s12  }
   0x3   : > { %p27_p1 = scmp.ge.s32.totalorder %s25_s15, 2  ;;  %p158_p2 = scmp.lt.s32.totalorder %s1030_s14, 3 }
   0x5   : > { %s1207_s15 = smov (%p27_p1, %s25_s15), 0  ;;  %p159_p3 = pnand %p970_p0, %p158_p2 }
   0x6   : > { %p191_p4 = scmp.lt.s32.totalorder (!%p159_p3), %s1022_s12, 1 }
   0x7   : > { %162 = sbr.rel (%p159_p3) target bundleno = 274 (0x112), region = 32 }
   0xc   : > { %v210_v0 = vld [vmem:[%s1201_s1] sm:$0xff]  ;;  %vm241_vm0 = vcmask 31744   ;;  %v211_v1 = vld [vmem:[%s1201_s1 + $0x8] sm:$0xff]  ;;  %v1032_v2 = vmov 0.0   ;;  %v212_v5 = vld [vmem:[%s1201_s1 + $0x10] sm:$0xff]  ;;  %s1209_s12 = smov (!%p191_p4, %s1022_s12), 1 }
   0xd   : > { %325 = vmatprep.mubr.f32.mxu0 %v1032_v2  ;;  %v243_v3 = vsel %vm241_vm0, %v210_v0, 0  ;;  %v246_v4 = vsel %vm241_vm0, %v211_v1, 0  ;;  %444 = vmatprep.mubr.f32.mxu1 %v1032_v2  ;;  %v213_v6 = vld [vmem:[%s1201_s1 + $0x18] sm:$0xff]  ;;  %v215_v7 = vld [vmem:[%s1202_s2] sm:$0xff]  ;;  %v249_v10 = vsel %vm241_vm0, %v212_v5, 0  ;;  %v1033_v12 = vmov 0  }
   0xe   : > { %v1091_v8 = vand.u32 4294901760, %v243_v3  ;;  %v1093_v9 = vand.u32 4294901760, %v246_v4  ;;  %v252_v11 = vsel %vm241_vm0, %v213_v6, 0  ;;  %1005 = vset.pattern.permute.xlu0 %v1033_v12  ;;  %1006 = vset.pattern.permute.xlu1 %v1033_v12  ;;  %v1095_v13 = vand.u32 4294901760, %v249_v10  ;;  %v217_v14 = vld [vmem:[%s1202_s2 + $0x10] sm:$0xff]  ;;  %s977_s28 = sshll.u32 %s1209_s12, 3 }
   0xf   : > { %221 = vperm.xlu0 %1005, %v215_v7   ;;  %vm254_vm1 = vcmask 1043456   ;;  %v216_v17 = vld [vmem:[%s1202_s2 + $0x8] sm:$0xff]  ;;  %231 = vperm.xlu1 %1006, %v217_v14   ;;  %s198_s6 = scalar_lea.vmem %s1200_s0, %s977_s28  ;;  %v1116_v19 = vand.u32 4294901760, %v252_v11  ;;  %v218_v20 = vld [vmem:[%s1202_s2 + $0x18] sm:$0xff]  ;;  %s978_s9 = sshll.u32 %s1209_s12, 6 }
  0x10   : > { %v1102_v15 = vsub.f32 %v243_v3, %v1091_v8  ;;  %v1105_v16 = vsub.f32 %v246_v4, %v1093_v9  ;;  %v1114_v18 = vsub.f32 %v249_v10, %v1095_v13  ;;  %v214_v21 = vld [vmem:[%s198_s6] sm:$0xff]  ;;  %s1179_s16 = scalar_lea.vmem %s1203_s3, %s978_s9 }
  0x11   : > { %v240_v24 = vcombine.high %v214_v21, %v214_v21  ;;  %v255_v25 = vsel %vm254_vm1, %v214_v21, 0  ;;  %v360_v30 = vsub.f32 %v252_v11, %v1116_v19 }
  0x12   : > { %v328_v22 = vand.u32 4294901760, %v1102_v15  ;;  %v339_v23 = vand.u32 4294901760, %v1105_v16  ;;  %v291_v26 = vand.u32 4294901760, %v255_v25  ;;  %v350_v29 = vand.u32 4294901760, %v1114_v18 }
  0x13   : > { %226 = vperm.xlu0 %1005, %v216_v17   ;;  %236 = vperm.xlu1 %1006, %v218_v20   ;;  %v257_v28 = vsel %vm254_vm1, %v240_v24, 0  ;;  %v361_v37 = vand.u32 4294901760, %v360_v30 }
  0x14   : > { %v329_v27 = vsub.f32 %v1102_v15, %v328_v22  ;;  %v289_v31 = vand.u32 4294901760, %v257_v28  ;;  %v340_v33 = vsub.f32 %v1105_v16, %v339_v23  ;;  %v407_v34 = vsub.f32 %v255_v25, %v291_v26 }
  0x15   : > { %v351_v41 = vsub.f32 %v1114_v18, %v350_v29  ;;  %v362_v46 = vsub.f32 %v360_v30, %v361_v37 }
  0x16   : > { %v330_v32 = vand.u32 4294901760, %v329_v27  ;;  %290 = vmatprep.subr.mxu0 %v289_v31  ;;  %v401_v35 = vsub.f32 %v257_v28, %v289_v31  ;;  %v408_v36 = vand.u32 4294901760, %v407_v34  ;;  %v341_v38 = vand.u32 4294901760, %v340_v33 }
  0x17   : > { %292 = vmatpush1.msra.mxu0 %v291_v26  ;;  %v352_v45 = vand.u32 4294901760, %v351_v41  ;;  %v363_v47 = vand.u32 4294901760, %v362_v46 }
  0x18   : > { %331 = vmatmul.mubr.f32.vlgmr.msra.gmra.mxu0 %v330_v32  ;;  %v402_v39 = vand.u32 4294901760, %v401_v35  ;;  %505 = vmatprep.subr.mxu0 %v401_v35  ;;  %v409_v40 = vsub.f32 %v407_v34, %v408_v36 }
  0x19   : > { %336 = vmatprep.mubr.f32.mxu0 %v1032_v2  ;;  %508 = vmatpush1.msra.mxu0 %v407_v34 }
  0x1a   : > { %v403_v42 = vsub.f32 %v401_v35, %v402_v39  ;;  %710 = vmatprep.subr.mxu0 %v402_v39  ;;  %v410_v43 = vand.u32 4294901760, %v409_v40 }
  0x1c   : > { %342 = vmatmul.mubr.f32.gmra.mxu0 %v341_v38  ;;  %v404_v44 = vand.u32 4294901760, %v403_v42 }
  0x1d   : > { %347 = vmatprep.mubr.f32.mxu0 %v1032_v2 }
  0x1e   : > { %405 = vmatprep.subr.mxu1 %v404_v44 }
  0x1f   : > { %411 = vmatpush1.msra.mxu1 %v410_v43 }
  0x20   : > { %353 = vmatmul.mubr.f32.gmra.mxu0 %v352_v45  ;;  %446 = vmatmul.mubr.f32.vlgmr.msra.gmra.mxu1 %v1091_v8 }
  0x21   : > { %605 = vmatprep.subr.mxu1 %v289_v31  ;;  %358 = vmatprep.mubr.f32.mxu0 %v1032_v2 }
  0x22   : > { %607 = vmatpush1.msra.mxu1 %v291_v26  ;;  %451 = vmatprep.mubr.f32.mxu1 %v1032_v2 }
  0x23   : > { %807 = vmatprep.subr.mxu1 %v289_v31 }
  0x24   : > { %364 = vmatmul.mubr.f32.gmra.mxu0 %v363_v47  ;;  %453 = vmatmul.mubr.f32.gmra.mxu1 %v1093_v9 }
  0x25   : > { %458 = vmatprep.mubr.f32.mxu1 %v1032_v2  ;;  %541 = vmatprep.mubr.f32.mxu0 %v1032_v2 }
  0x28   : > { %460 = vmatmul.mubr.f32.gmra.mxu1 %v1095_v13  ;;  %544 = vmatmul.mubr.f32.vlgmr.msra.gmra.mxu0 %v1102_v15 }
  0x29   : > { %465 = vmatprep.mubr.f32.mxu1 %v1032_v2  ;;  %549 = vmatprep.mubr.f32.mxu0 %v1032_v2 }
  0x2a   : > { %714 = vmatpush1.msra.mxu0 %v408_v36 }
  0x2c   : > { %467 = vmatmul.mubr.f32.gmra.mxu1 %v1116_v19  ;;  %552 = vmatmul.mubr.f32.gmra.mxu0 %v1105_v16 }
  0x2d   : > { %557 = vmatprep.mubr.f32.mxu0 %v1032_v2  ;;  %640 = vmatprep.mubr.f32.mxu1 %v1032_v2 }
  0x30   : > { %560 = vmatmul.mubr.f32.gmra.mxu0 %v1114_v18  ;;  %644 = vmatmul.mubr.f32.vlgmr.msra.gmra.mxu1 %v328_v22 }
  0x31   : > { %809 = vmatpush1.msra.mxu1 %v291_v26  ;;  %565 = vmatprep.mubr.f32.mxu0 %v1032_v2 }
  0x32   : > { %649 = vmatprep.mubr.f32.mxu1 %v1032_v2 }
  0x34   : > { %568 = vmatmul.mubr.f32.gmra.mxu0 %v360_v30  ;;  %653 = vmatmul.mubr.f32.gmra.mxu1 %v339_v23 }
  0x35   : > { %658 = vmatprep.mubr.f32.mxu1 %v1032_v2  ;;  %747 = vmatprep.mubr.f32.mxu0 %v1032_v2 }
  0x38   : > { %662 = vmatmul.mubr.f32.gmra.mxu1 %v350_v29  ;;  %749 = vmatmul.mubr.f32.vlgmr.msra.gmra.mxu0 %v1091_v8 }
  0x39   : > { %667 = vmatprep.mubr.f32.mxu1 %v1032_v2  ;;  %754 = vmatprep.mubr.f32.mxu0 %v1032_v2 }
  0x3c   : > { %671 = vmatmul.mubr.f32.gmra.mxu1 %v361_v37  ;;  %756 = vmatmul.mubr.f32.gmra.mxu0 %v1093_v9 }
  0x3d   : > { %761 = vmatprep.mubr.f32.mxu0 %v1032_v2  ;;  %842 = vmatprep.mubr.f32.mxu1 %v1032_v2 }
  0x40   : > { %763 = vmatmul.mubr.f32.gmra.mxu0 %v1095_v13  ;;  %844 = vmatmul.mubr.f32.vlgmr.msra.gmra.mxu1 %v1091_v8 }
  0x41   : > { %768 = vmatprep.mubr.f32.mxu0 %v1032_v2  ;;  %849 = vmatprep.mubr.f32.mxu1 %v1032_v2 }
  0x44   : > { %770 = vmatmul.mubr.f32.gmra.mxu0 %v1116_v19  ;;  %851 = vmatmul.mubr.f32.gmra.mxu1 %v1093_v9 }
  0x45   : > { %856 = vmatprep.mubr.f32.mxu1 %v1032_v2 }
  0x48   : > { %858 = vmatmul.mubr.f32.gmra.mxu1 %v1095_v13 }
  0x49   : > { %863 = vmatprep.mubr.f32.mxu1 %v1032_v2 }
  0x4c   : > { %865 = vmatmul.mubr.f32.gmra.mxu1 %v1116_v19 }
  0x8a   : > { %v222_v4 = vpop.permute.xlu0 %221  ;;  %v232_v15 = vpop.permute.xlu1 %231 }
  0x8e   : > { %v227_v12 = vpop.permute.xlu0 %226  ;;  %v237_v31 = vpop.permute.xlu1 %236 }
  0xd8   : > { %v332_v48 = vpop.f32.mrf.mxu0 }
  0xd9   : > { %v333_v11 = vadd.f32 %v332_v48, %v222_v4 }
  0xda   : > { %v334_v49 = vpop.f32.mrf.mxu0 }
  0xdb   : > { %v335_v18 = vadd.f32 %v334_v49, %v222_v4 }
  0xdc   : > { %v343_v50 = vpop.f32.mrf.mxu0 }
  0xdd   : > { %v344_v20 = vadd.f32 %v343_v50, %v227_v12 }
  0xde   : > { %v345_v51 = vpop.f32.mrf.mxu0 }
  0xdf   : > { %v346_v28 = vadd.f32 %v345_v51, %v227_v12 }
  0xe0   : > { %v354_v52 = vpop.f32.mrf.mxu0  ;;  %v447_v53 = vpop.f32.mrf.mxu1 }
  0xe1   : > { %v448_v19 = vadd.f32 %v447_v53, %v333_v11  ;;  %v355_v25 = vadd.f32 %v354_v52, %v232_v15 }
  0xe2   : > { %v356_v54 = vpop.f32.mrf.mxu0  ;;  %v449_v55 = vpop.f32.mrf.mxu1 }
  0xe3   : > { %v450_v23 = vadd.f32 %v449_v55, %v335_v18  ;;  %v357_v39 = vadd.f32 %v356_v54, %v232_v15 }
  0xe4   : > { %v365_v56 = vpop.f32.mrf.mxu0  ;;  %v454_v57 = vpop.f32.mrf.mxu1 }
  0xe5   : > { %v455_v29 = vadd.f32 %v454_v57, %v344_v20  ;;  %v366_v41 = vadd.f32 %v365_v56, %v237_v31 }
  0xe6   : > { %v1171_v58 = vpop.f32.mrf.mxu0  ;;  %v456_v59 = vpop.f32.mrf.mxu1 }
  0xe7   : > { %v457_v35 = vadd.f32 %v456_v59, %v346_v28  ;;  %v368_v54 = vadd.f32 %v1171_v58, %v237_v31 }
  0xe8   : > { %v461_v60 = vpop.f32.mrf.mxu1  ;;  %v545_v61 = vpop.f32.mrf.mxu0 }
  0xe9   : > { %v546_v24 = vadd.f32 %v545_v61, %v448_v19  ;;  %v462_v40 = vadd.f32 %v461_v60, %v355_v25 }
  0xea   : > { %v463_v62 = vpop.f32.mrf.mxu1  ;;  %v547_v63 = vpop.f32.mrf.mxu0 }
  0xeb   : > { %v548_v30 = vadd.f32 %v547_v63, %v450_v23  ;;  %v464_v48 = vadd.f32 %v463_v62, %v357_v39 }
  0xec   : > { %v468_v0 = vpop.f32.mrf.mxu1  ;;  %v553_v1 = vpop.f32.mrf.mxu0 }
  0xed   : > { %v554_v36 = vadd.f32 %v553_v1, %v455_v29  ;;  %v469_v57 = vadd.f32 %v468_v0, %v366_v41 }
  0xee   : > { %v1173_v2 = vpop.f32.mrf.mxu1  ;;  %v555_v3 = vpop.f32.mrf.mxu0 }
  0xef   : > { %v556_v44 = vadd.f32 %v555_v3, %v457_v35  ;;  %v471_v62 = vadd.f32 %v1173_v2, %v368_v54 }
  0xf0   : > { %v561_v5 = vpop.f32.mrf.mxu0  ;;  %v645_v6 = vpop.f32.mrf.mxu1 }
  0xf1   : > { %v646_v32 = vadd.f32 %v645_v6, %v546_v24  ;;  %v562_v51 = vadd.f32 %v561_v5, %v462_v40 }
  0xf2   : > { %v563_v7 = vpop.f32.mrf.mxu0  ;;  %v647_v8 = vpop.f32.mrf.mxu1 }
  0xf3   : > { %v648_v37 = vadd.f32 %v647_v8, %v548_v30  ;;  %v564_v59 = vadd.f32 %v563_v7, %v464_v48 }
  0xf4   : > { %v569_v9 = vpop.f32.mrf.mxu0  ;;  %v654_v10 = vpop.f32.mrf.mxu1 }
  0xf5   : > { %v655_v45 = vadd.f32 %v654_v10, %v554_v36  ;;  %v570_v4 = vadd.f32 %v569_v9, %v469_v57 }
  0xf6   : > { %v571_v13 = vpop.f32.mrf.mxu0  ;;  %v656_v14 = vpop.f32.mrf.mxu1 }
  0xf7   : > { %v657_v52 = vadd.f32 %v656_v14, %v556_v44  ;;  %v572_v0 = vadd.f32 %v571_v13, %v471_v62 }
  0xf8   : > { %v663_v16 = vpop.f32.mrf.mxu1  ;;  %v750_v17 = vpop.f32.mrf.mxu0 }
  0xf9   : > { %v751_v38 = vadd.f32 %v750_v17, %v646_v32  ;;  %v664_v60 = vadd.f32 %v663_v16, %v562_v51 }
  0xfa   : > { %v665_v21 = vpop.f32.mrf.mxu1  ;;  %v752_v22 = vpop.f32.mrf.mxu0 }
  0xfb   : > { %v753_v46 = vadd.f32 %v752_v22, %v648_v37  ;;  %v666_v5 = vadd.f32 %v665_v21, %v564_v59 }
  0xfc   : > { %v672_v26 = vpop.f32.mrf.mxu1  ;;  %v757_v27 = vpop.f32.mrf.mxu0 }
  0xfd   : > { %v758_v53 = vadd.f32 %v757_v27, %v655_v45  ;;  %v673_v7 = vadd.f32 %v672_v26, %v570_v4 }
  0xfe   : > { %v674_v33 = vpop.f32.mrf.mxu1  ;;  %v759_v34 = vpop.f32.mrf.mxu0 }
  0xff   : > { %v760_v61 = vadd.f32 %v759_v34, %v657_v52  ;;  %v675_v2 = vadd.f32 %v674_v33, %v572_v0 }
 0x100   : > { %v764_v42 = vpop.f32.mrf.mxu0  ;;  %v845_v43 = vpop.f32.mrf.mxu1 }
 0x101   : > { %v846_v47 = vadd.f32 %v845_v43, %v751_v38  ;;  %v765_v6 = vadd.f32 %v764_v42, %v664_v60 }
 0x102   : > { %v766_v49 = vpop.f32.mrf.mxu0  ;;  %v847_v50 = vpop.f32.mrf.mxu1 }
 0x103   : > { %871 = vst [vmem:[%s1179_s16] sm:$0xff] %v846_v47  ;;  %v848_v55 = vadd.f32 %v847_v50, %v753_v46  ;;  %v767_v10 = vadd.f32 %v766_v49, %v666_v5 }
 0x104   : > { %v852_v56 = vpop.f32.mrf.mxu1  ;;  %v771_v1 = vpop.f32.mrf.mxu0 }
 0x105   : > { %872 = vst [vmem:[%s1179_s16 + $0x8] sm:$0xff] %v848_v55  ;;  %v853_v63 = vadd.f32 %v852_v56, %v758_v53  ;;  %v772_v15 = vadd.f32 %v771_v1, %v673_v7 }
 0x106   : > { %v854_v3 = vpop.f32.mrf.mxu1  ;;  %v773_v12 = vpop.f32.mrf.mxu0 }
 0x107   : > { %873 = vst [vmem:[%s1179_s16 + $0x10] sm:$0xff] %v853_v63  ;;  %v855_v8 = vadd.f32 %v854_v3, %v760_v61  ;;  %v774_v17 = vadd.f32 %v773_v12, %v675_v2 }
 0x108   : > { %v859_v58 = vpop.f32.mrf.mxu1 }
 0x109   : > { %874 = vst [vmem:[%s1179_s16 + $0x18] sm:$0xff] %v855_v8  ;;  %v860_v11 = vadd.f32 %v859_v58, %v765_v6 }
 0x10a   : > { %v861_v14 = vpop.f32.mrf.mxu1 }
 0x10b   : > { %875 = vst [vmem:[%s1179_s16 + $0x20] sm:$0xff] %v860_v11  ;;  %v862_v16 = vadd.f32 %v861_v14, %v767_v10 }
 0x10c   : > { %v866_v9 = vpop.f32.mrf.mxu1 }
 0x10d   : > { %876 = vst [vmem:[%s1179_s16 + $0x28] sm:$0xff] %v862_v16  ;;  %v867_v18 = vadd.f32 %v866_v9, %v772_v15 }
 0x10e   : > { %v868_v19 = vpop.f32.mrf.mxu1 }
 0x10f   : > { %877 = vst [vmem:[%s1179_s16 + $0x30] sm:$0xff] %v867_v18  ;;  %v869_v20 = vadd.f32 %v868_v19, %v774_v17 }
 0x111   : > { %878 = vst [vmem:[%s1179_s16 + $0x38] sm:$0xff] %v869_v20 }
 0x112 PF: > { %s13_s14 = sadd.s32 1, %s1030_s14   ;;  %s1204_s12 = smov %s1026_s13 }
 0x113   : > { %p10_p5 = scmp.ge.s32.totalorder %s13_s14, 4   ;;  %s1205_s13 = smov %s1207_s15 }
 0x115   :  { %12 = sbr.rel (!%p10_p5) target bundleno = 2 (0x2), region = 62 }

</bundles_post_ra>
